<compile_context>
chip_gen: v5e
topology: v5e:2x2
jax: 0.10.0
libtpu: 0.0.40
codegen_flags: <defaults>
</compile_context>

<pallas_src>
import math

import jax
import jax.numpy as jnp
from jax.experimental import pallas as pl
from jax.experimental.pallas import tpu as pltpu


# ---------------------------------------------------------------------------
# Host-side sizing helpers (pad-aware VMEM accounting, generation-aware budget)
# ---------------------------------------------------------------------------

def _ru(x, m):
    return ((x + m - 1) // m) * m


def _padded_bytes(rows, cols, itemsize):
    """Bytes one (rows, cols) 2-D tile actually occupies in VMEM:
    lanes padded to 128, sublanes padded to 8 (f32) / 16 (bf16) / 32 (int8)."""
    sub = max(8, 32 // max(int(itemsize), 1))
    return _ru(int(rows), sub) * _ru(int(cols), 128) * int(itemsize)


def _vmem_bytes(b, ih, iw, oh, ow, itemsize):
    """Pad-aware VMEM estimate for one grid step: double-buffered pipelined
    blocks plus every f32 temporary the kernel materializes."""
    pipelined = 2 * b * _padded_bytes(ih, iw, itemsize)      # input block (x2 buffers)
    pipelined += 2 * b * _padded_bytes(oh, ow, itemsize)     # output block (x2 buffers)
    tmp = _padded_bytes(oh, ih, 4) + _padded_bytes(iw, ow, 4)  # interp matrices (in-kernel)
    tmp += b * _padded_bytes(ih, iw, 4)                      # x cast to f32
    tmp += b * _padded_bytes(ih, ow, 4)                      # xw = x @ rwt
    tmp += b * _padded_bytes(oh, ih, 4)                      # rh broadcast to (B, OH, IH)
    tmp += b * _padded_bytes(oh, ow, 4)                      # y before the store cast
    return pipelined + tmp


def _tpu_vmem_and_cores():
    """Per-core VMEM capacity and TensorCores per chip.  Conservative defaults
    (64 MiB, 1 core) if the trace-time query is unavailable."""
    vmem = 64 << 20
    cores = 1
    try:
        info = pltpu.get_tpu_info()
        vmem = int(getattr(info, "vmem_capacity_bytes", vmem) or vmem)
        for attr in ("num_cores", "core_count", "tensorcores_per_chip",
                     "num_tensorcores"):
            v = getattr(info, attr, None)
            if v:
                cores = int(v)
                break
    except Exception:
        pass
    return vmem, cores


def _choose_planes_per_step(P, ih, iw, oh, ow, itemsize, vmem_budget, n_cores):
    """Planes (H,W images) processed per grid step.

    Priorities (high -> low):
      1. fit the pad-aware VMEM estimate (hard cap),
      2. ONE grid step on single-TC chips (v5e/v6e); >= n_cores steps on
         multi-TC chips (v7x) so the "parallel" axis can be core-sharded,
      3. MXU-height floor B*IH >= 256 (W-resize matmul not pure fill/drain),
      4. B divides P (the wrapper never pads => no extra HBM pass).
    The old B*OW lane-density rounding is gone: the kernel now writes per-plane
    NCHW blocks directly, so there is no lane-dense output slab to preserve.
    """
    def fits(b):
        return _vmem_bytes(b, ih, iw, oh, ow, itemsize) <= vmem_budget

    b = max(1, P)
    while b > 1 and not fits(b):
        b = max(1, b // 2)
    b_cap = b                                            # (1) hard VMEM cap

    if n_cores >= 2 and P >= 2:                          # (2) one step per TensorCore
        b = min(b, max(1, -(-P // n_cores)))
    mxu_floor = min(-(-256 // max(ih, 1)), b_cap)        # (3) amortize MXU fill/drain
    if n_cores < 2 or mxu_floor * n_cores <= P:
        b = max(b, mxu_floor)
    if P % b != 0:                                       # (4) avoid wrapper-side padding
        for cand in range(min(b, P), max(b // 2, 0), -1):
            if P % cand == 0:
                b = cand
                break
    return max(1, min(b, b_cap))


# ---------------------------------------------------------------------------
# Kernel
# ---------------------------------------------------------------------------

def _interp_matrix(n_out, n_in, transposed):
    """1-D bilinear (align_corners=False / half-pixel) interpolation matrix,
    built in-kernel from 2-D iotas (VPU only: no identity matrix, no gather,
    no HBM DMA).  Returns (n_out, n_in), or (n_in, n_out) if `transposed`."""
    scale = n_in / n_out
    shape = (n_in, n_out) if transposed else (n_out, n_in)
    out_ax = 1 if transposed else 0
    in_ax = 1 - out_ax
    dst = jax.lax.broadcasted_iota(jnp.int32, shape, out_ax).astype(jnp.float32)
    src_col = jax.lax.broadcasted_iota(jnp.int32, shape, in_ax).astype(jnp.float32)
    src = jnp.maximum((dst + 0.5) * scale - 0.5, 0.0)   # PyTorch clamps negatives to 0
    i0 = jnp.clip(jnp.floor(src), 0.0, float(n_in - 1))
    i1 = jnp.minimum(i0 + 1.0, float(n_in - 1))
    w1 = src - i0
    w0 = 1.0 - w1
    # Exact integer comparisons in f32 (indices << 2^24).
    return jnp.where(src_col == i0, w0, 0.0) + jnp.where(src_col == i1, w1, 0.0)


def _make_interp_kernel(B, IH, IW, OH, OW):
    def kernel(x_ref, o_ref):
        # x_ref: (B, IH, IW)   o_ref: (B, OH, OW)
        rwt = _interp_matrix(OW, IW, transposed=True)    # (IW, OW)
        rh = _interp_matrix(OH, IH, transposed=False)    # (OH, IH)

        x = x_ref[...].astype(jnp.float32)               # (B, IH, IW)
        # W-resize: one MXU matmul, plane batch on the M axis (leading-dim
        # reshapes only -- minor dim untouched, no re-layout).
        xw = jnp.dot(x.reshape(B * IH, IW), rwt,
                     preferred_element_type=jnp.float32).reshape(B, IH, OW)
        # H-resize: batched MXU matmul; result is already in per-plane NCHW
        # layout, so there is no in-kernel lane re-layout and no wrapper-side
        # output transpose pass.
        rh_b = jnp.broadcast_to(rh, (B, OH, IH))
        y = jnp.einsum('bok,bkw->bow', rh_b, xw,
                       preferred_element_type=jnp.float32)  # (B, OH, OW)
        o_ref[...] = y.astype(o_ref.dtype)

    return kernel


# ---------------------------------------------------------------------------
# Wrapper
# ---------------------------------------------------------------------------

def interpolate_bilinear(x, size):
    """NCHW bilinear resize, align_corners=False (PyTorch F.interpolate
    semantics, antialias=False)."""
    assert x.ndim == 4, "only 4-D NCHW input supported"
    N, C, IH, IW = x.shape
    OH, OW = int(size[0]), int(size[1])
    P = N * C

    itemsize = jnp.dtype(x.dtype).itemsize
    vmem_cap, n_cores = _tpu_vmem_and_cores()
    # Generation-aware budget: ~21 MiB on a 64 MiB (v7x) part, ~42 MiB on
    # 128 MiB parts (v5e/v6e); leaves room for compiler scratch.
    budget = min(vmem_cap // 3, 48 << 20)

    B = _choose_planes_per_step(P, IH, IW, OH, OW, itemsize, budget, n_cores)
    G = -(-P // B)
    P_pad = G * B

    x_flat = x.reshape(P, IH, IW)
    if P_pad != P:
        # TODO(synk): handle the ragged last step with a masked/short block
        # instead of this full-HBM pad copy (only hit when no cheap divisor of
        # P exists; the B-selection prefers divisors of P).
        x_flat = jnp.pad(x_flat, ((0, P_pad - P), (0, 0), (0, 0)))

    est = _vmem_bytes(B, IH, IW, OH, OW, itemsize)
    vmem_limit = int(max(32 << 20,
                         min(vmem_cap - (8 << 20), 2 * est + (8 << 20))))

    out = pl.pallas_call(
        _make_interp_kernel(B, IH, IW, OH, OW),
        out_shape=jax.ShapeDtypeStruct((P_pad, OH, OW), x.dtype),
        grid_spec=pltpu.PrefetchScalarGridSpec(
            num_scalar_prefetch=0,
            grid=(G,),
            in_specs=[pl.BlockSpec((B, IH, IW), lambda g: (g, 0, 0))],
            out_specs=pl.BlockSpec((B, OH, OW), lambda g: (g, 0, 0)),
        ),
        compiler_params=pltpu.CompilerParams(
            dimension_semantics=("parallel",),
            vmem_limit_bytes=vmem_limit),
    )(x_flat)

    if P_pad != P:
        out = out[:P]
    # Contiguous reshape only -- no extra HBM transpose pass on the output.
    return out.reshape(N, C, OH, OW)


class Interpolate:
    """JAX/Pallas port of the PyTorch Interpolate module
    (mode='bilinear', align_corners=False)."""

    def __init__(self, size, mode):
        assert mode == "bilinear", "only mode='bilinear' implemented"
        # TODO(synk): other F.interpolate modes (nearest/bicubic/trilinear/area)
        # are not implemented.
        if isinstance(size, int):
            size = (size, size)
        self.size = tuple(int(s) for s in size)
        self.mode = mode
        self._fn = jax.jit(lambda x: interpolate_bilinear(x, self.size))

    def __call__(self, x):
        return self._fn(x)


if __name__ == "__main__":
    key = jax.random.PRNGKey(0)
    N, C, H, W = 2, 4, 16, 16
    out_size = (32, 32)

    x = jax.random.normal(key, (N, C, H, W), dtype=jnp.float32)

    module = Interpolate(size=out_size, mode="bilinear")
    y = jax.block_until_ready(module(x))

    # Sanity check against jax.image.resize.  NOTE: this reference matches
    # PyTorch semantics only in the UPSAMPLING regime (jax.image.resize
    # antialiases on downscale; F.interpolate / this kernel use a fixed
    # 2-tap kernel).
    ref = jax.image.resize(x, (N, C) + out_size, method="bilinear")
    assert y.shape == (N, C) + out_size
    assert jnp.allclose(y, ref, atol=1e-5, rtol=1e-5), "mismatch vs reference resize"

    print("KERNEL_OK")
</pallas_src>

<mosaic_0001>
module attributes {stable_mosaic.version = 11 : i64} {
  func.func @kernel(%arg0: i32, %arg1: memref<8x16x16xf32, #tpu.memory_space<vmem>>, %arg2: memref<8x32x32xf32, #tpu.memory_space<vmem>>) attributes {dimension_semantics = [#tpu.dimension_semantics<parallel>], iteration_bounds = array<i64: 1>, scalar_prefetch = 0 : i64, scratch_operands = 0 : i64, tpu.core_type = #tpu.core_type<tc>, window_params = [{transform_indices = @transform_0, window_bounds = array<i64: 8, 16, 16>}, {transform_indices = @transform_1, window_bounds = array<i64: 8, 32, 32>}]} {
    %0 = tpu.iota {dimensions = array<i32: 1>} : vector<16x32xi32>
    %1 = arith.sitofp %0 : vector<16x32xi32> to vector<16x32xf32>
    %2 = tpu.iota {dimensions = array<i32: 0>} : vector<16x32xi32>
    %3 = arith.sitofp %2 : vector<16x32xi32> to vector<16x32xf32>
    %cst = arith.constant 5.000000e-01 : f32
    %4 = vector.broadcast %cst : f32 to vector<16x32xf32>
    %5 = arith.addf %1, %4 : vector<16x32xf32>
    %cst_0 = arith.constant 5.000000e-01 : f32
    %6 = vector.broadcast %cst_0 : f32 to vector<16x32xf32>
    %7 = arith.mulf %5, %6 : vector<16x32xf32>
    %cst_1 = arith.constant 5.000000e-01 : f32
    %8 = vector.broadcast %cst_1 : f32 to vector<16x32xf32>
    %9 = arith.subf %7, %8 : vector<16x32xf32>
    %cst_2 = arith.constant 0.000000e+00 : f32
    %10 = vector.broadcast %cst_2 : f32 to vector<16x32xf32>
    %11 = arith.maximumf %9, %10 : vector<16x32xf32>
    %12 = math.floor %11 : vector<16x32xf32>
    %cst_3 = arith.constant 0.000000e+00 : f32
    %cst_4 = arith.constant 1.500000e+01 : f32
    %13 = vector.broadcast %cst_3 : f32 to vector<16x32xf32>
    %14 = arith.maximumf %13, %12 : vector<16x32xf32>
    %15 = vector.broadcast %cst_4 : f32 to vector<16x32xf32>
    %16 = arith.minimumf %15, %14 : vector<16x32xf32>
    %cst_5 = arith.constant 1.000000e+00 : f32
    %17 = vector.broadcast %cst_5 : f32 to vector<16x32xf32>
    %18 = arith.addf %16, %17 : vector<16x32xf32>
    %cst_6 = arith.constant 1.500000e+01 : f32
    %19 = vector.broadcast %cst_6 : f32 to vector<16x32xf32>
    %20 = arith.minimumf %18, %19 : vector<16x32xf32>
    %21 = arith.subf %11, %16 : vector<16x32xf32>
    %cst_7 = arith.constant 1.000000e+00 : f32
    %22 = vector.broadcast %cst_7 : f32 to vector<16x32xf32>
    %23 = arith.subf %22, %21 : vector<16x32xf32>
    %24 = arith.cmpf oeq, %3, %16 : vector<16x32xf32>
    %cst_8 = arith.constant 0.000000e+00 : f32
    %25 = vector.broadcast %cst_8 : f32 to vector<16x32xf32>
    %26 = arith.select %24, %23, %25 : vector<16x32xi1>, vector<16x32xf32>
    %27 = arith.cmpf oeq, %3, %20 : vector<16x32xf32>
    %cst_9 = arith.constant 0.000000e+00 : f32
    %28 = vector.broadcast %cst_9 : f32 to vector<16x32xf32>
    %29 = arith.select %27, %21, %28 : vector<16x32xi1>, vector<16x32xf32>
    %30 = arith.addf %26, %29 : vector<16x32xf32>
    %31 = tpu.iota {dimensions = array<i32: 0>} : vector<32x16xi32>
    %32 = arith.sitofp %31 : vector<32x16xi32> to vector<32x16xf32>
    %33 = tpu.iota {dimensions = array<i32: 1>} : vector<32x16xi32>
    %34 = arith.sitofp %33 : vector<32x16xi32> to vector<32x16xf32>
    %cst_10 = arith.constant 5.000000e-01 : f32
    %35 = vector.broadcast %cst_10 : f32 to vector<32x16xf32>
    %36 = arith.addf %32, %35 : vector<32x16xf32>
    %cst_11 = arith.constant 5.000000e-01 : f32
    %37 = vector.broadcast %cst_11 : f32 to vector<32x16xf32>
    %38 = arith.mulf %36, %37 : vector<32x16xf32>
    %cst_12 = arith.constant 5.000000e-01 : f32
    %39 = vector.broadcast %cst_12 : f32 to vector<32x16xf32>
    %40 = arith.subf %38, %39 : vector<32x16xf32>
    %cst_13 = arith.constant 0.000000e+00 : f32
    %41 = vector.broadcast %cst_13 : f32 to vector<32x16xf32>
    %42 = arith.maximumf %40, %41 : vector<32x16xf32>
    %43 = math.floor %42 : vector<32x16xf32>
    %cst_14 = arith.constant 0.000000e+00 : f32
    %cst_15 = arith.constant 1.500000e+01 : f32
    %44 = vector.broadcast %cst_14 : f32 to vector<32x16xf32>
    %45 = arith.maximumf %44, %43 : vector<32x16xf32>
    %46 = vector.broadcast %cst_15 : f32 to vector<32x16xf32>
    %47 = arith.minimumf %46, %45 : vector<32x16xf32>
    %cst_16 = arith.constant 1.000000e+00 : f32
    %48 = vector.broadcast %cst_16 : f32 to vector<32x16xf32>
    %49 = arith.addf %47, %48 : vector<32x16xf32>
    %cst_17 = arith.constant 1.500000e+01 : f32
    %50 = vector.broadcast %cst_17 : f32 to vector<32x16xf32>
    %51 = arith.minimumf %49, %50 : vector<32x16xf32>
    %52 = arith.subf %42, %47 : vector<32x16xf32>
    %cst_18 = arith.constant 1.000000e+00 : f32
    %53 = vector.broadcast %cst_18 : f32 to vector<32x16xf32>
    %54 = arith.subf %53, %52 : vector<32x16xf32>
    %55 = arith.cmpf oeq, %34, %47 : vector<32x16xf32>
    %cst_19 = arith.constant 0.000000e+00 : f32
    %56 = vector.broadcast %cst_19 : f32 to vector<32x16xf32>
    %57 = arith.select %55, %54, %56 : vector<32x16xi1>, vector<32x16xf32>
    %58 = arith.cmpf oeq, %34, %51 : vector<32x16xf32>
    %cst_20 = arith.constant 0.000000e+00 : f32
    %59 = vector.broadcast %cst_20 : f32 to vector<32x16xf32>
    %60 = arith.select %58, %52, %59 : vector<32x16xi1>, vector<32x16xf32>
    %61 = arith.addf %57, %60 : vector<32x16xf32>
    %c0 = arith.constant 0 : index
    %c0_21 = arith.constant 0 : index
    %c0_22 = arith.constant 0 : index
    %62 = vector.load %arg1[%c0, %c0_21, %c0_22] : memref<8x16x16xf32, #tpu.memory_space<vmem>>, vector<8x16x16xf32>
    %63 = vector.shape_cast %62 : vector<8x16x16xf32> to vector<128x16xf32>
    %cst_23 = arith.constant dense<0.000000e+00> : vector<128x32xf32>
    %64 = tpu.matmul %63, %30, %cst_23 {dimension_numbers = #tpu.dot_dimension_numbers<[1], [0], [0], [1], [0, 0, 1, 1], [], []>} : vector<128x16xf32>, vector<16x32xf32>, vector<128x32xf32> -> vector<128x32xf32>
    %65 = vector.shape_cast %64 : vector<128x32xf32> to vector<8x16x32xf32>
    %66 = vector.shape_cast %61 : vector<32x16xf32> to vector<1x32x16xf32>
    %67 = vector.broadcast %66 : vector<1x32x16xf32> to vector<8x32x16xf32>
    "tpu.trace_start"() <{level = 10 : i32, message = "bok,bkw->bow"}> : () -> ()
    %cst_24 = arith.constant dense<0.000000e+00> : vector<8x32x32xf32>
    %68 = tpu.matmul %67, %65, %cst_24 {dimension_numbers = #tpu.dot_dimension_numbers<[2], [1], [1], [2], [0, 0, 0, 1, 1, 2], [0], [0]>} : vector<8x32x16xf32>, vector<8x16x32xf32>, vector<8x32x32xf32> -> vector<8x32x32xf32>
    "tpu.trace_stop"() : () -> ()
    %c0_25 = arith.constant 0 : index
    %c0_26 = arith.constant 0 : index
    %c0_27 = arith.constant 0 : index
    %69 = vector.load %arg2[%c0_25, %c0_26, %c0_27] : memref<8x32x32xf32, #tpu.memory_space<vmem>>, vector<8x32x32xf32>
    tpu.vector_store %arg2[%c0_25, %c0_26, %c0_27], %68 {strides = array<i32>} : memref<8x32x32xf32, #tpu.memory_space<vmem>>, vector<8x32x32xf32>,
    return
  }
  func.func @transform_0(%arg0: i32) -> (i32, i32, i32) {
    %c0_i32 = arith.constant 0 : i32
    %c0_i32_0 = arith.constant 0 : i32
    %c0_i32_1 = arith.constant 0 : i32
    return %arg0, %c0_i32, %c0_i32_0 : i32, i32, i32
  }
  func.func @transform_1(%arg0: i32) -> (i32, i32, i32) {
    %c0_i32 = arith.constant 0 : i32
    %c0_i32_0 = arith.constant 0 : i32
    %c0_i32_1 = arith.constant 0 : i32
    return %arg0, %c0_i32, %c0_i32_0 : i32, i32, i32
  }
}

</mosaic_0001>

<bundles_post_ra>
// kernel: _lambda_.1
= control target key start
LH: loop header
LB: loop body
LE: loop exit
PB: predicated region body
PF: predicated region fallthrough
CT: control target
= control target key end

     0   :  { %6 = vsyncpa [#allocation3], 0  ;;  %s802_s0 = inlined_call_operand.hbm [shape: f32[8,16,16], index: 0, kind: input, shape index: {}]   ;;  %s803_s1 = inlined_call_operand.hbm [shape: f32[8,32,32], index: 1, kind: output, shape index: {}]  }
   0x1   :  { %7 = vsyncpa [#allocation4], 0  ;;  %s12_s8 = sshll.u32 %s802_s0, 4  ;;  %s659_s9 = smov [#allocation2]   ;;  %s13_s8 = int_to_ptr.hbm [resolvable:$true] %s12_s8 }
   0x2   :  { %s14_s10 = sshll.u32 %s659_s9, 4  ;;  %s660_s11 = smov 128   ;;  %s15_s10 = int_to_ptr.vmem [resolvable:$true] %s14_s10 }
   0x3   :  { %s661_s12 = smov 8  }
   0x4   :  { %20 = dma.hbm_to_vmem [thread:$0]  %s13_s8, 2048, %s15_s10, [#allocation3], %s660_s11, %s660_s11, %s661_s12  }
   0x5   :  { %655 = dma.done.wait [#allocation3], 2048  }
   0x6   :  { %656 = vsyncadd [#allocation3], 4294965248  ;;  %v25_v0 = vlaneseq  ;;  %v122_v24 = vld [vmem:[#allocation2] sm:$0xff]  ;;  %vm138_vm4 = vcmask 130048   ;;  %v123_v25 = vld [vmem:[#allocation2 + $0x8] sm:$0xff]  ;;  %vm496_vm13 = vcmask 261120  }
   0x7   :  { %v124_v26 = vld [vmem:[#allocation2 + $0x10] sm:$0xff]  ;;  %v125_v27 = vld [vmem:[#allocation2 + $0x18] sm:$0xff]  ;;  %v126_v28 = vld [vmem:[#allocation2 + $0x20] sm:$0xff]  ;;  %s662_s0 = smov [#allocation5]   ;;  %s535_s16 = sshll.u32 %s803_s1, 4  ;;  %s536_s16 = int_to_ptr.hbm [resolvable:$true] %s535_s16 }
   0x8   :  { %v26_v1 = vand.u32 127, %v25_v0  ;;  %v682_v5 = vshrl.u32 %v25_v0, 7  ;;  %v134_v29 = vld [vmem:[#allocation2 + $0x60] sm:$0xff]  ;;  %v127_v30 = vld [vmem:[#allocation2 + $0x28] sm:$0xff]  ;;  %v128_v32 = vld [vmem:[#allocation2 + $0x30] sm:$0xff]  ;;  %s533_s13 = sshll.u32 %s662_s0, 4  ;;  %s534_s13 = int_to_ptr.vmem [resolvable:$true] %s533_s13 }
   0x9   :  { %v135_v31 = vld [vmem:[#allocation2 + $0x68] sm:$0xff]  ;;  %v136_v33 = vld [vmem:[#allocation2 + $0x70] sm:$0xff]  ;;  %v129_v34 = vld [vmem:[#allocation2 + $0x38] sm:$0xff] }
   0xa   :  { %v679_v2 = vcvt.s32.f32 %v26_v1  ;;  %v30_v8 = vadd.s32 8, %v682_v5  ;;  %v31_v15 = vcvt.s32.f32 %v682_v5  ;;  %v137_v35 = vld [vmem:[#allocation2 + $0x78] sm:$0xff]  ;;  %v130_v36 = vld [vmem:[#allocation2 + $0x40] sm:$0xff]  ;;  %v131_v37 = vld [vmem:[#allocation2 + $0x48] sm:$0xff]  ;;  %v54_v42 = vadd.s32 16, %v682_v5 }
   0xb   :  { %v132_v38 = vld [vmem:[#allocation2 + $0x50] sm:$0xff]  ;;  %v133_v39 = vld [vmem:[#allocation2 + $0x58] sm:$0xff]  ;;  %v55_v48 = vadd.s32 24, %v682_v5 }
   0xc   :  { %v33_v3 = vadd.f32 0.5, %v679_v2  ;;  %v32_v11 = vcvt.s32.f32 %v30_v8  ;;  %v58_v40 = vadd.f32 0.5, %v31_v15  ;;  %v56_v45 = vcvt.s32.f32 %v54_v42 }
   0xd   :  { %v57_v52 = vcvt.s32.f32 %v55_v48 }
   0xe   :  { %v34_v4 = vmul.f32 0.5, %v33_v3  ;;  %v62_v41 = vmul.f32 0.5, %v58_v40  ;;  %v59_v43 = vadd.f32 0.5, %v32_v11  ;;  %v60_v49 = vadd.f32 0.5, %v56_v45 }
   0xf   :  { %v61_v56 = vadd.f32 0.5, %v57_v52 }
  0x10   :  { %v548_v6 = vadd.f32 -0.5, %v34_v4  ;;  %v549_v44 = vadd.f32 -0.5, %v62_v41  ;;  %v63_v46 = vmul.f32 0.5, %v59_v43  ;;  %v64_v53 = vmul.f32 0.5, %v60_v49 }
  0x11   :  { %v65_v60 = vmul.f32 0.5, %v61_v56 }
  0x12   :  { %v36_v7 = vmax.f32 %v548_v6, 0.0  ;;  %v70_v47 = vmax.f32 %v549_v44, 0.0  ;;  %v550_v50 = vadd.f32 -0.5, %v63_v46  ;;  %v551_v57 = vadd.f32 -0.5, %v64_v53 }
  0x13   :  { %v552_v0 = vadd.f32 -0.5, %v65_v60 }
  0x14   :  { %v37_v9 = vfloor.f32 %v36_v7  ;;  %v74_v51 = vfloor.f32 %v70_v47  ;;  %v71_v54 = vmax.f32 %v550_v50, 0.0  ;;  %v72_v61 = vmax.f32 %v551_v57, 0.0 }
  0x16   :  { %v38_v10 = vmax.f32 %v37_v9, 0.0  ;;  %v78_v55 = vmax.f32 %v74_v51, 0.0  ;;  %v75_v58 = vfloor.f32 %v71_v54  ;;  %v76_v3 = vfloor.f32 %v72_v61 }
  0x18   :  { %v39_v12 = vmin.f32 %v38_v10, 15.0  ;;  %v82_v59 = vmin.f32 %v78_v55, 15.0  ;;  %v79_v62 = vmax.f32 %v75_v58, 0.0  ;;  %v80_v9 = vmax.f32 %v76_v3, 0.0 }
  0x1a   :  { %v40_v13 = vadd.f32 1.0, %v39_v12  ;;  %v42_v14 = vsub.f32 %v36_v7, %v39_v12  ;;  %vm45_vm0 = vcmp.eq.f32.partialorder %v32_v11, %v39_v12  ;;  %vm44_vm2 = vcmp.eq.f32.partialorder %v31_v15, %v39_v12 }
  0x1b   :  { %v86_v63 = vadd.f32 1.0, %v82_v59  ;;  %v94_v1 = vsub.f32 %v70_v47, %v82_v59  ;;  %v83_v4 = vmin.f32 %v79_v62, 15.0  ;;  %v73_v7 = vmax.f32 %v552_v0, 0.0 }
  0x1c   :  { %v41_v16 = vmin.f32 %v40_v13, 15.0  ;;  %v43_v17 = vsub.f32 1.0, %v42_v14  ;;  %vm102_vm5 = vcmp.eq.f32.partialorder %v679_v2, %v82_v59 }
  0x1d   :  { %v90_v5 = vmin.f32 %v86_v63, 15.0  ;;  %v98_v8 = vsub.f32 1.0, %v94_v1  ;;  %v87_v10 = vadd.f32 1.0, %v83_v4  ;;  %vm103_vm7 = vcmp.eq.f32.partialorder %v679_v2, %v83_v4 }
  0x1e   :  { %v47_v18 = vsel %vm45_vm0, %v43_v17, 0.0  ;;  %vm49_vm1 = vcmp.eq.f32.partialorder %v32_v11, %v41_v16  ;;  %v46_v21 = vsel %vm44_vm2, %v43_v17, 0.0  ;;  %vm48_vm3 = vcmp.eq.f32.partialorder %v31_v15, %v41_v16 }
  0x1f   :  { %v51_v19 = vsel %vm49_vm1, %v42_v14, 0.0  ;;  %v50_v22 = vsel %vm48_vm3, %v42_v14, 0.0  ;;  %vm110_vm6 = vcmp.eq.f32.partialorder %v679_v2, %v90_v5  ;;  %v95_v11 = vsub.f32 %v71_v54, %v83_v4 }
  0x20   :  { %v53_v20 = vadd.f32 %v51_v19, %v47_v18  ;;  %v52_v23 = vadd.f32 %v50_v22, %v46_v21  ;;  %v106_v12 = vsel %vm102_vm5, %v98_v8, 0.0  ;;  %v114_v13 = vsel %vm110_vm6, %v94_v1, 0.0 }
  0x21   :  { %v77_v14 = vfloor.f32 %v73_v7  ;;  %v84_v15 = vmin.f32 %v80_v9, 15.0  ;;  %v91_v16 = vmin.f32 %v87_v10, 15.0  ;;  %v706_v18 = vadd.f32 %v114_v13, %v106_v12 }
  0x22   :  { %201 = vmatpush.msra.mxu0 %v53_v20  ;;  %601 = vmatpush.msra.mxu3 %v53_v20  ;;  %v99_v19 = vsub.f32 1.0, %v95_v11 }
  0x23   :  { %v81_v20 = vmax.f32 %v77_v14, 0.0  ;;  %v88_v21 = vadd.f32 1.0, %v84_v15  ;;  %vm111_vm8 = vcmp.eq.f32.partialorder %v679_v2, %v91_v16  ;;  %vm104_vm10 = vcmp.eq.f32.partialorder %v679_v2, %v84_v15 }
  0x24   :  { %202 = vmatpush.msra.mxu0 %v52_v23  ;;  %602 = vmatpush.msra.mxu3 %v52_v23  ;;  %v107_v22 = vsel %vm103_vm7, %v99_v19, 0.0  ;;  %v115_v23 = vsel %vm111_vm8, %v95_v11, 0.0 }
  0x25   :  { %553 = vmatmul.msk.f32.vlgmr.msra.gmra.mxu0 %vm138_vm4, %v122_v24  ;;  %565 = vmatmul.msk.f32.vlgmr.msra.gmra.mxu3 %vm138_vm4, %v134_v29  ;;  %v85_v24 = vmin.f32 %v81_v20, 15.0 }
  0x27   :  { %v89_v29 = vadd.f32 1.0, %v85_v24  ;;  %vm105_vm12 = vcmp.eq.f32.partialorder %v679_v2, %v85_v24 }
  0x2d   :  { %554 = vmatmul.msk.f32.gmra.mxu0 %vm138_vm4, %v123_v25  ;;  %566 = vmatmul.msk.f32.gmra.mxu3 %vm138_vm4, %v135_v31  ;;  %v92_v25 = vmin.f32 %v88_v21, 15.0 }
  0x2f   :  { %vm112_vm9 = vcmp.eq.f32.partialorder %v679_v2, %v92_v25 }
  0x35   :  { %555 = vmatmul.msk.f32.gmra.mxu0 %vm138_vm4, %v124_v26  ;;  %567 = vmatmul.msk.f32.gmra.mxu3 %vm138_vm4, %v136_v33 }
  0x3d   :  { %556 = vmatmul.msk.f32.gmra.mxu0 %vm138_vm4, %v125_v27  ;;  %568 = vmatmul.msk.f32.gmra.mxu3 %vm138_vm4, %v137_v35  ;;  %v96_v27 = vsub.f32 %v72_v61, %v84_v15 }
  0x3f   :  { %v116_v31 = vsel %vm112_vm9, %v96_v27, 0.0 }
  0x45   :  { %557 = vmatmul.msk.f32.gmra.mxu0 %vm138_vm4, %v126_v28  ;;  %v712_v28 = vadd.f32 %v115_v23, %v107_v22 }
  0x4d   :  { %558 = vmatmul.msk.f32.gmra.mxu0 %vm138_vm4, %v127_v30  ;;  %v100_v30 = vsub.f32 1.0, %v96_v27 }
  0x4f   :  { %v108_v35 = vsel %vm104_vm10, %v100_v30, 0.0 }
  0x55   :  { %559 = vmatmul.msk.f32.gmra.mxu0 %vm138_vm4, %v128_v32  ;;  %v93_v32 = vmin.f32 %v89_v29, 15.0 }
  0x57   :  { %vm113_vm11 = vcmp.eq.f32.partialorder %v679_v2, %v93_v32 }
  0x5d   :  { %560 = vmatmul.msk.f32.gmra.mxu0 %vm138_vm4, %v129_v34  ;;  %v97_v34 = vsub.f32 %v73_v7, %v85_v24 }
  0x65   :  { %561 = vmatmul.msk.f32.gmra.mxu0 %vm138_vm4, %v130_v36  ;;  %v120_v36 = vadd.f32 %v116_v31, %v108_v35 }
  0x6d   :  { %562 = vmatmul.msk.f32.gmra.mxu0 %vm138_vm4, %v131_v37  ;;  %v101_v37 = vsub.f32 1.0, %v97_v34 }
  0x6f   :  { %v109_v40 = vsel %vm105_vm12, %v101_v37, 0.0 }
  0x75   :  { %563 = vmatmul.msk.f32.gmra.mxu0 %vm138_vm4, %v132_v38  ;;  %v117_v38 = vsel %vm113_vm11, %v97_v34, 0.0 }
  0x76   :  { %v121_v41 = vadd.f32 %v117_v38, %v109_v40 }
  0x7d   :  { %564 = vmatmul.msk.f32.gmra.mxu0 %vm138_vm4, %v133_v39 }
  0xa2   :  { %v204_v6 = vpop.f32.mrf.mxu0 }
  0xa8   :  { %v240_v43 = vpop.f32.mrf.mxu3 }
  0xaa   :  { %v207_v17 = vpop.f32.mrf.mxu0 }
  0xab   :  { %278 = vmatpush.msra.mxu1 %v207_v17 }
  0xad   :  { %279 = vmatpush.msra.mxu1 %v204_v6 }
  0xae   :  { %569 = vmatmul.msk.f32.vlgmr.msra.gmra.mxu1 %vm138_vm4, %v706_v18 }
  0xb0   :  { %v243_v2 = vpop.f32.mrf.mxu3 }
  0xb2   :  { %v210_v26 = vpop.f32.mrf.mxu0 }
  0xb6   :  { %570 = vmatmul.msk.f32.gmra.mxu1 %vm138_vm4, %v712_v28 }
  0xb8   :  { %v246_v46 = vpop.f32.mrf.mxu3 }
  0xba   :  { %v213_v33 = vpop.f32.mrf.mxu0 }
  0xbb   :  { %307 = vmatpush.msra.mxu2 %v213_v33 }
  0xbd   :  { %308 = vmatpush.msra.mxu2 %v210_v26 }
  0xbe   :  { %573 = vmatmul.msk.f32.vlgmr.msra.gmra.mxu2 %vm138_vm4, %v706_v18  ;;  %571 = vmatmul.msk.f32.gmra.mxu1 %vm138_vm4, %v120_v36 }
  0xc0   :  { %v249_v49 = vpop.f32.mrf.mxu3 }
  0xc2   :  { %v216_v39 = vpop.f32.mrf.mxu0 }
  0xc6   :  { %574 = vmatmul.msk.f32.gmra.mxu2 %vm138_vm4, %v712_v28  ;;  %572 = vmatmul.msk.f32.gmra.mxu1 %vm138_vm4, %v121_v41 }
  0xca   :  { %v219_v42 = vpop.f32.mrf.mxu0 }
  0xcb   :  { %336 = vmatpush.msrb.mxu3 %v219_v42 }
  0xcd   :  { %337 = vmatpush.msrb.mxu3 %v216_v39 }
  0xce   :  { %575 = vmatmul.msk.f32.gmra.mxu2 %vm138_vm4, %v120_v36  ;;  %577 = vmatmul.msk.f32.vlgmr.msrb.gmra.mxu3 %vm138_vm4, %v706_v18 }
  0xd2   :  { %v222_v44 = vpop.f32.mrf.mxu0 }
  0xd6   :  { %576 = vmatmul.msk.f32.gmra.mxu2 %vm138_vm4, %v121_v41  ;;  %578 = vmatmul.msk.f32.gmra.mxu3 %vm138_vm4, %v712_v28 }
  0xda   :  { %v225_v45 = vpop.f32.mrf.mxu0 }
  0xdb   :  { %365 = vmatpush.msrb.mxu1 %v225_v45 }
  0xdd   :  { %366 = vmatpush.msrb.mxu1 %v222_v44 }
  0xde   :  { %579 = vmatmul.msk.f32.gmra.mxu3 %vm138_vm4, %v120_v36  ;;  %581 = vmatmul.msk.f32.vlgmr.msrb.gmra.mxu1 %vm138_vm4, %v706_v18 }
  0xdf   :  { %452 = vmatpush.msra.mxu1 %v243_v2 }
  0xe1   :  { %453 = vmatpush.msra.mxu1 %v240_v43 }
  0xe2   :  { %v228_v47 = vpop.f32.mrf.mxu0 }
  0xe6   :  { %580 = vmatmul.msk.f32.gmra.mxu3 %vm138_vm4, %v121_v41  ;;  %582 = vmatmul.msk.f32.gmra.mxu1 %vm138_vm4, %v712_v28 }
  0xea   :  { %v231_v48 = vpop.f32.mrf.mxu0 }
  0xeb   :  { %394 = vmatpush.msrb.mxu2 %v231_v48 }
  0xed   :  { %395 = vmatpush.msrb.mxu2 %v228_v47 }
  0xee   :  { %585 = vmatmul.msk.f32.vlgmr.msrb.gmra.mxu2 %vm138_vm4, %v706_v18  ;;  %583 = vmatmul.msk.f32.gmra.mxu1 %vm138_vm4, %v120_v36 }
  0xef   :  { %481 = vmatpush.msra.mxu2 %v249_v49 }
  0xf1   :  { %482 = vmatpush.msra.mxu2 %v246_v46 }
  0xf2   :  { %v234_v50 = vpop.f32.mrf.mxu0 }
  0xf6   :  { %586 = vmatmul.msk.f32.gmra.mxu2 %vm138_vm4, %v712_v28  ;;  %584 = vmatmul.msk.f32.gmra.mxu1 %vm138_vm4, %v121_v41 }
  0xfa   :  { %v237_v51 = vpop.f32.mrf.mxu0 }
  0xfb   :  { %423 = vmatpush.msra.mxu3 %v237_v51 }
  0xfd   :  { %424 = vmatpush.msra.mxu3 %v234_v50 }
  0xfe   :  { %589 = vmatmul.msk.f32.vlgmr.msra.gmra.mxu3 %vm138_vm4, %v706_v18  ;;  %587 = vmatmul.msk.f32.gmra.mxu2 %vm138_vm4, %v120_v36 }
  0xff   :  { %593 = vmatmul.msk.f32.vlgmr.msra.gmra.mxu1 %vm138_vm4, %v706_v18 }
 0x106   :  { %590 = vmatmul.msk.f32.gmra.mxu3 %vm138_vm4, %v712_v28  ;;  %588 = vmatmul.msk.f32.gmra.mxu2 %vm138_vm4, %v121_v41 }
 0x107   :  { %594 = vmatmul.msk.f32.gmra.mxu1 %vm138_vm4, %v712_v28 }
 0x10e   :  { %591 = vmatmul.msk.f32.gmra.mxu3 %vm138_vm4, %v120_v36  ;;  %597 = vmatmul.msk.f32.vlgmr.msra.gmra.mxu2 %vm138_vm4, %v706_v18 }
 0x10f   :  { %595 = vmatmul.msk.f32.gmra.mxu1 %vm138_vm4, %v120_v36 }
 0x116   :  { %592 = vmatmul.msk.f32.gmra.mxu3 %vm138_vm4, %v121_v41  ;;  %598 = vmatmul.msk.f32.gmra.mxu2 %vm138_vm4, %v712_v28 }
 0x117   :  { %596 = vmatmul.msk.f32.gmra.mxu1 %vm138_vm4, %v121_v41 }
 0x11e   :  { %599 = vmatmul.msk.f32.gmra.mxu2 %vm138_vm4, %v120_v36 }
 0x126   :  { %600 = vmatmul.msk.f32.gmra.mxu2 %vm138_vm4, %v121_v41 }
 0x12b   :  { %v281_v52 = vpop.f32.mrf.mxu1 }
 0x12c   :  { %497 = vst.msk [vmem:[#allocation5] sm:$0xff] %vm496_vm13, %v281_v52 }
 0x133   :  { %v284_v53 = vpop.f32.mrf.mxu1 }
 0x134   :  { %498 = vst.msk [vmem:[#allocation5 + $0x8] sm:$0xff] %vm496_vm13, %v284_v53 }
 0x13b   :  { %v287_v54 = vpop.f32.mrf.mxu1 }
 0x13c   :  { %499 = vst.msk [vmem:[#allocation5 + $0x10] sm:$0xff] %vm496_vm13, %v287_v54 }
 0x141   :  { %v310_v55 = vpop.f32.mrf.mxu2 }
 0x142   :  { %501 = vst.msk [vmem:[#allocation5 + $0x20] sm:$0xff] %vm496_vm13, %v310_v55 }
 0x143   :  { %v290_v56 = vpop.f32.mrf.mxu1 }
 0x144   :  { %500 = vst.msk [vmem:[#allocation5 + $0x18] sm:$0xff] %vm496_vm13, %v290_v56 }
 0x149   :  { %v313_v57 = vpop.f32.mrf.mxu2 }
 0x14a   :  { %502 = vst.msk [vmem:[#allocation5 + $0x28] sm:$0xff] %vm496_vm13, %v313_v57 }
 0x151   :  { %v316_v58 = vpop.f32.mrf.mxu2  ;;  %v339_v59 = vpop.f32.mrf.mxu3 }
 0x152   :  { %503 = vst.msk [vmem:[#allocation5 + $0x30] sm:$0xff] %vm496_vm13, %v316_v58 }
 0x153   :  { %505 = vst.msk [vmem:[#allocation5 + $0x40] sm:$0xff] %vm496_vm13, %v339_v59 }
 0x159   :  { %v319_v60 = vpop.f32.mrf.mxu2  ;;  %v342_v61 = vpop.f32.mrf.mxu3 }
 0x15a   :  { %504 = vst.msk [vmem:[#allocation5 + $0x38] sm:$0xff] %vm496_vm13, %v319_v60 }
 0x15b   :  { %506 = vst.msk [vmem:[#allocation5 + $0x48] sm:$0xff] %vm496_vm13, %v342_v61  ;;  %v368_v62 = vpop.f32.mrf.mxu1 }
 0x15c   :  { %509 = vst.msk [vmem:[#allocation5 + $0x60] sm:$0xff] %vm496_vm13, %v368_v62 }
 0x161   :  { %v345_v63 = vpop.f32.mrf.mxu3 }
 0x162   :  { %507 = vst.msk [vmem:[#allocation5 + $0x50] sm:$0xff] %vm496_vm13, %v345_v63 }
 0x163   :  { %v371_v0 = vpop.f32.mrf.mxu1 }
 0x164   :  { %510 = vst.msk [vmem:[#allocation5 + $0x68] sm:$0xff] %vm496_vm13, %v371_v0 }
 0x169   :  { %v348_v1 = vpop.f32.mrf.mxu3 }
 0x16a   :  { %508 = vst.msk [vmem:[#allocation5 + $0x58] sm:$0xff] %vm496_vm13, %v348_v1 }
 0x16b   :  { %v374_v3 = vpop.f32.mrf.mxu1 }
 0x16c   :  { %511 = vst.msk [vmem:[#allocation5 + $0x70] sm:$0xff] %vm496_vm13, %v374_v3 }
 0x171   :  { %v397_v4 = vpop.f32.mrf.mxu2 }
 0x172   :  { %513 = vst.msk [vmem:[#allocation5 + $0x80] sm:$0xff] %vm496_vm13, %v397_v4 }
 0x173   :  { %v377_v5 = vpop.f32.mrf.mxu1 }
 0x174   :  { %512 = vst.msk [vmem:[#allocation5 + $0x78] sm:$0xff] %vm496_vm13, %v377_v5 }
 0x179   :  { %v400_v6 = vpop.f32.mrf.mxu2 }
 0x17a   :  { %514 = vst.msk [vmem:[#allocation5 + $0x88] sm:$0xff] %vm496_vm13, %v400_v6 }
 0x17c   :  { %v455_v7 = vpop.f32.mrf.mxu1 }
 0x17d   :  { %521 = vst.msk [vmem:[#allocation5 + $0xc0] sm:$0xff] %vm496_vm13, %v455_v7 }
 0x181   :  { %v426_v8 = vpop.f32.mrf.mxu3  ;;  %v403_v9 = vpop.f32.mrf.mxu2 }
 0x182   :  { %517 = vst.msk [vmem:[#allocation5 + $0xa0] sm:$0xff] %vm496_vm13, %v426_v8 }
 0x183   :  { %515 = vst.msk [vmem:[#allocation5 + $0x90] sm:$0xff] %vm496_vm13, %v403_v9 }
 0x184   :  { %v458_v10 = vpop.f32.mrf.mxu1 }
 0x185   :  { %522 = vst.msk [vmem:[#allocation5 + $0xc8] sm:$0xff] %vm496_vm13, %v458_v10 }
 0x189   :  { %v429_v11 = vpop.f32.mrf.mxu3  ;;  %v406_v12 = vpop.f32.mrf.mxu2 }
 0x18a   :  { %518 = vst.msk [vmem:[#allocation5 + $0xa8] sm:$0xff] %vm496_vm13, %v429_v11 }
 0x18b   :  { %516 = vst.msk [vmem:[#allocation5 + $0x98] sm:$0xff] %vm496_vm13, %v406_v12 }
 0x18c   :  { %v461_v13 = vpop.f32.mrf.mxu1 }
 0x18d   :  { %523 = vst.msk [vmem:[#allocation5 + $0xd0] sm:$0xff] %vm496_vm13, %v461_v13 }
 0x191   :  { %v432_v14 = vpop.f32.mrf.mxu3  ;;  %v484_v15 = vpop.f32.mrf.mxu2 }
 0x192   :  { %519 = vst.msk [vmem:[#allocation5 + $0xb0] sm:$0xff] %vm496_vm13, %v432_v14 }
 0x193   :  { %525 = vst.msk [vmem:[#allocation5 + $0xe0] sm:$0xff] %vm496_vm13, %v484_v15 }
 0x194   :  { %v464_v16 = vpop.f32.mrf.mxu1 }
 0x195   :  { %524 = vst.msk [vmem:[#allocation5 + $0xd8] sm:$0xff] %vm496_vm13, %v464_v16 }
 0x199   :  { %v435_v17 = vpop.f32.mrf.mxu3  ;;  %v487_v18 = vpop.f32.mrf.mxu2 }
 0x19a   :  { %520 = vst.msk [vmem:[#allocation5 + $0xb8] sm:$0xff] %vm496_vm13, %v435_v17 }
 0x19b   :  { %526 = vst.msk [vmem:[#allocation5 + $0xe8] sm:$0xff] %vm496_vm13, %v487_v18 }
 0x1a1   :  { %v490_v19 = vpop.f32.mrf.mxu2 }
 0x1a2   :  { %527 = vst.msk [vmem:[#allocation5 + $0xf0] sm:$0xff] %vm496_vm13, %v490_v19 }
 0x1a9   :  { %v493_v20 = vpop.f32.mrf.mxu2 }
 0x1aa   :  { %528 = vst.msk [vmem:[#allocation5 + $0xf8] sm:$0xff] %vm496_vm13, %v493_v20 }
 0x1ab   :  { %541 = dma.vmem_to_hbm [thread:$0]  %s534_s13, 4096, %s536_s16, [#allocation4], %s660_s11, %s660_s11, %s661_s12  }
 0x1ac   :  { %657 = dma.done.wait [#allocation4], 4096  }
 0x1ad   :  { %658 = vsyncadd [#allocation4], 4294963200 }
 0x1ae   :  { %546 = vsyncpa [#allocation3], 1 }
 0x1af   :  { %547 = vsyncpa [#allocation4], 1 }

</bundles_post_ra>
